<compile_context>
chip_gen: v7x
topology: tpu7x:2x2x1
jax: 0.10.0
libtpu: 0.0.40
codegen_flags: <defaults>
</compile_context>

<pallas_src>
import functools

import jax
import jax.numpy as jnp
from jax.experimental import pallas as pl
from jax.experimental.pallas import tpu as pltpu


def _round_up(n, m):
    return (n + m - 1) // m * m


# ------------------------- parameter / input packing (one-time) -------------------------

def pack_params(params, *, weight_dtype=jnp.float32):
    """Pack (w1, b1, w2, b2, w3, b3) into three compact VMEM-resident arrays.

      w1p : (feats_pad, 64)  weight_dtype   (feats zero-padded to a multiple of 8)
      w2p : (64, 32)         weight_dtype
      vec : (8, 64)          float32        row0=b1, row1=b2[:32], row2=w3^T[:32], row3=b3

    weight_dtype=jnp.bfloat16 halves weight DMA bytes and uses MXU-native bf16
    (recommended on v6e / v7x); biases stay f32 either way.
    """
    w1, b1, w2, b2, w3, b3 = params
    feats = w1.shape[0]
    feats_pad = _round_up(feats, 8)
    w1p = jnp.zeros((feats_pad, 64), weight_dtype).at[:feats, :].set(w1.astype(weight_dtype))
    w2p = w2.astype(weight_dtype)
    vec = jnp.zeros((8, 64), jnp.float32)
    vec = vec.at[0, 0:64].set(b1.reshape(64).astype(jnp.float32))
    vec = vec.at[1, 0:32].set(b2.reshape(32).astype(jnp.float32))
    vec = vec.at[2, 0:32].set(w3.reshape(32).astype(jnp.float32))   # w3 transposed row
    vec = vec.at[3, 0].set(b3.reshape(()).astype(jnp.float32))
    return w1p, w2p, vec


def pad_inputs(x2d, *, b_tile=128, dtype=jnp.float32):
    """Pad a (B, feats) batch to (B_pad, feats_pad) ONCE at data-prep time
    (keeps the pad off the per-call latency path).  Returns (x_padded, b_tile)."""
    b, feats = x2d.shape
    feats_pad = _round_up(feats, 8)
    bt = min(b_tile, _round_up(b, 8))
    b_pad = _round_up(b, bt)
    xp = jnp.zeros((b_pad, feats_pad), dtype)
    xp = xp.at[:b, :feats].set(x2d.astype(dtype))
    return xp, bt


# ----------------------------------- kernel -----------------------------------

def _softplus(x):
    # numerically stable softplus: max(x,0) + log1p(exp(-|x|))  (matches torch)
    return jnp.maximum(x, 0.0) + jnp.log1p(jnp.exp(-jnp.abs(x)))


def _teacher_kernel(x_ref, w1_ref, w2_ref, vec_ref, o_ref):
    cd = w1_ref.dtype                       # matmul operand dtype (f32 or bf16)
    x = x_ref[...]                          # (B_tile, feats_pad)

    b1 = vec_ref[0:1, 0:64]                 # (1, 64) f32
    b2 = vec_ref[1:2, 0:32]                 # (1, 32) f32
    w3t = vec_ref[2:3, 0:32]                # (1, 32) f32  (w3 transposed)
    b3 = vec_ref[3:4, 0:1]                  # (1, 1)  f32

    # Linear(feats, 64) + Softplus
    h = jnp.dot(x.astype(cd), w1_ref[...], preferred_element_type=jnp.float32) + b1
    h = _softplus(h)
    # TODO(synk): Dropout(0.3) implemented as identity (eval/inference semantics).

    # Linear(64, 32) + Softplus
    h = jnp.dot(h.astype(cd), w2_ref[...], preferred_element_type=jnp.float32) + b2
    h = _softplus(h)

    # Linear(32, 1) + Sigmoid, produced lane-dense: (1,32)·(B_tile,32)^T -> (1,B_tile)
    z = jnp.einsum("ok,bk->ob", w3t, h, preferred_element_type=jnp.float32) + b3
    o_ref[...] = 1.0 / (1.0 + jnp.exp(-z))   # exact sigmoid


# ----------------------------------- wrappers -----------------------------------

@functools.partial(jax.jit, static_argnames=("b_tile",))
def teacher_forward_batched(x_padded, w1p, w2p, vecp, *, b_tile=128):
    """x_padded: (B_pad, feats_pad) from pad_inputs().  Returns (1, B_pad) f32,
    the sigmoid output of batch row b stored lane-dense at lane b."""
    b_pad, feats_pad = x_padded.shape
    assert b_pad % b_tile == 0 and feats_pad == w1p.shape[0]
    nb = b_pad // b_tile

    vmem = pl.BlockSpec(memory_space=pltpu.MemorySpace.VMEM)   # whole array, resident
    nbytes = lambda a: a.size * a.dtype.itemsize
    cost = pl.CostEstimate(
        flops=b_pad * (2 * feats_pad * 64 + 64 + 2 * 64 * 32 + 32 + 2 * 32 + 1),
        transcendentals=b_pad * (2 * 64 + 2 * 32 + 1),
        bytes_accessed=nbytes(x_padded) + nbytes(w1p) + nbytes(w2p)
                       + nbytes(vecp) + 4 * b_pad,
    )
    return pl.pallas_call(
        _teacher_kernel,
        out_shape=jax.ShapeDtypeStruct((1, b_pad), jnp.float32),
        grid_spec=pltpu.PrefetchScalarGridSpec(
            num_scalar_prefetch=0,
            grid=(nb,),
            in_specs=[
                pl.BlockSpec((b_tile, feats_pad), lambda i: (i, 0)),   # x tiles over B
                vmem, vmem, vmem,                                      # w1, w2, vectors
            ],
            out_specs=pl.BlockSpec((1, b_tile), lambda i: (0, i)),     # lane-dense out
        ),
        compiler_params=pltpu.CompilerParams(
            dimension_semantics=("parallel",)),    # v7x: shard B tiles across both TCs
        cost_estimate=cost,
    )(x_padded, w1p, w2p, vecp)


def teacher_forward(x, packed_params):
    """Exactly the torch module's semantics: x.flatten() -> shape (1,) output."""
    w1p, w2p, vecp = packed_params
    xp, bt = pad_inputs(x.reshape(1, -1), b_tile=8)
    out = teacher_forward_batched(xp, w1p, w2p, vecp, b_tile=bt)
    return out[0, :1]


# --------------------------- init + pure-JAX reference ---------------------------

def init_params(key, feats):
    """Mimics nn.Linear default init: U(-1/sqrt(fan_in), 1/sqrt(fan_in))."""
    ks = jax.random.split(key, 6)

    def linear(kw, kb, fan_in, fan_out):
        bound = 1.0 / float(fan_in) ** 0.5
        w = jax.random.uniform(kw, (fan_in, fan_out), jnp.float32, -bound, bound)
        b = jax.random.uniform(kb, (1, fan_out), jnp.float32, -bound, bound)
        return w, b

    w1, b1 = linear(ks[0], ks[1], feats, 64)
    w2, b2 = linear(ks[2], ks[3], 64, 32)
    w3, b3 = linear(ks[4], ks[5], 32, 1)
    return (w1, b1, w2, b2, w3, b3)


def reference_forward_batched(xb, params):
    """Pure-JAX reference (f32, HIGHEST matmul precision)."""
    w1, b1, w2, b2, w3, b3 = params
    hp = jax.lax.Precision.HIGHEST
    h = jax.nn.softplus(jnp.dot(xb, w1, precision=hp) + b1)
    h = jax.nn.softplus(jnp.dot(h, w2, precision=hp) + b2)
    return jax.nn.sigmoid(jnp.dot(h, w3, precision=hp) + b3)   # (B, 1)


if __name__ == "__main__":
    key = jax.random.PRNGKey(0)
    k_x, k_xb, k_p = jax.random.split(key, 3)

    # --- single-sample path (exact module semantics): x.flatten() -> (1,) ---
    x = jax.random.normal(k_x, (4, 8), jnp.float32)    # flattened feats = 32
    feats = x.size
    params = init_params(k_p, feats)
    packed_f32 = pack_params(params, weight_dtype=jnp.float32)

    out1 = jax.block_until_ready(teacher_forward(x, packed_f32))
    ref1 = reference_forward_batched(x.reshape(1, -1), params).reshape(1)
    assert out1.shape == (1,)
    assert jnp.allclose(out1, ref1, atol=2e-4, rtol=2e-4), (out1, ref1)

    # --- batched path: (B, feats) through a parallel grid over 128-row tiles ---
    B = 256
    xb = jax.random.normal(k_xb, (B, feats), jnp.float32)
    xp, bt = pad_inputs(xb, b_tile=128)                 # padded once, off the hot path
    w1p, w2p, vecp = packed_f32

    outb = jax.block_until_ready(teacher_forward_batched(xp, w1p, w2p, vecp, b_tile=bt))
    outb = outb[0, :B]
    refb = reference_forward_batched(xb, params).reshape(B)
    assert jnp.allclose(outb, refb, atol=2e-4, rtol=2e-4), float(jnp.max(jnp.abs(outb - refb)))

    # --- bf16-at-MXU variant (recommended on v6e / v7x): looser tolerance ---
    w1b, w2b, vecb = pack_params(params, weight_dtype=jnp.bfloat16)
    outbf = jax.block_until_ready(teacher_forward_batched(xp, w1b, w2b, vecb, b_tile=bt))
    outbf = outbf[0, :B]
    assert jnp.allclose(outbf, refb, atol=2e-2, rtol=2e-2), float(jnp.max(jnp.abs(outbf - refb)))

    print("KERNEL_OK")
</pallas_src>

<mosaic_0001>
module attributes {stable_mosaic.version = 11 : i64} {
  func.func @_teacher_kernel(%arg0: i32, %arg1: memref<8x32xf32, #tpu.memory_space<vmem>>, %arg2: memref<32x64xf32, #tpu.memory_space<vmem>>, %arg3: memref<64x32xf32, #tpu.memory_space<vmem>>, %arg4: memref<8x64xf32, #tpu.memory_space<vmem>>, %arg5: memref<1x8xf32, #tpu.memory_space<vmem>>) attributes {dimension_semantics = [#tpu.dimension_semantics<parallel>], iteration_bounds = array<i64: 1>, scalar_prefetch = 0 : i64, scratch_operands = 0 : i64, tpu.core_type = #tpu.core_type<tc>, window_params = [{transform_indices = @transform_0, window_bounds = array<i64: 8, 32>}, {pipeline_mode = #tpu.pipeline_mode<synchronous>, transform_indices = @transform_1, window_bounds = array<i64: 32, 64>}, {pipeline_mode = #tpu.pipeline_mode<synchronous>, transform_indices = @transform_2, window_bounds = array<i64: 64, 32>}, {pipeline_mode = #tpu.pipeline_mode<synchronous>, transform_indices = @transform_3, window_bounds = array<i64: 8, 64>}, {transform_indices = @transform_4, window_bounds = array<i64: 1, 8>}]} {
    %c0 = arith.constant 0 : index
    %c0_0 = arith.constant 0 : index
    %0 = vector.load %arg1[%c0, %c0_0] : memref<8x32xf32, #tpu.memory_space<vmem>>, vector<8x32xf32>
    %c0_1 = arith.constant 0 : index
    %c0_2 = arith.constant 0 : index
    %1 = vector.load %arg4[%c0_1, %c0_2] : memref<8x64xf32, #tpu.memory_space<vmem>>, vector<1x64xf32>
    %c1 = arith.constant 1 : index
    %c0_3 = arith.constant 0 : index
    %2 = vector.load %arg4[%c1, %c0_3] : memref<8x64xf32, #tpu.memory_space<vmem>>, vector<1x32xf32>
    %c2 = arith.constant 2 : index
    %c0_4 = arith.constant 0 : index
    %3 = vector.load %arg4[%c2, %c0_4] : memref<8x64xf32, #tpu.memory_space<vmem>>, vector<1x32xf32>
    %c3 = arith.constant 3 : index
    %c0_5 = arith.constant 0 : index
    %4 = vector.load %arg4[%c3, %c0_5] : memref<8x64xf32, #tpu.memory_space<vmem>>, vector<1x1xf32>
    %c0_6 = arith.constant 0 : index
    %c0_7 = arith.constant 0 : index
    %5 = vector.load %arg2[%c0_6, %c0_7] : memref<32x64xf32, #tpu.memory_space<vmem>>, vector<32x64xf32>
    %cst = arith.constant dense<0.000000e+00> : vector<8x64xf32>
    %6 = tpu.matmul %0, %5, %cst {dimension_numbers = #tpu.dot_dimension_numbers<[1], [0], [0], [1], [0, 0, 1, 1], [], []>} : vector<8x32xf32>, vector<32x64xf32>, vector<8x64xf32> -> vector<8x64xf32>
    %7 = vector.broadcast %1 : vector<1x64xf32> to vector<8x64xf32>
    %8 = arith.addf %6, %7 : vector<8x64xf32>
    %cst_8 = arith.constant 0.000000e+00 : f32
    %9 = vector.broadcast %cst_8 : f32 to vector<8x64xf32>
    %10 = arith.maximumf %8, %9 : vector<8x64xf32>
    %11 = math.absf %8 : vector<8x64xf32>
    %cst_9 = arith.constant 0.000000e+00 : f32
    %12 = vector.broadcast %cst_9 : f32 to vector<8x64xf32>
    %13 = arith.subf %12, %11 : vector<8x64xf32>
    %14 = math.exp %13 : vector<8x64xf32>
    %15 = math.log1p %14 : vector<8x64xf32>
    %16 = arith.addf %10, %15 : vector<8x64xf32>
    %c0_10 = arith.constant 0 : index
    %c0_11 = arith.constant 0 : index
    %17 = vector.load %arg3[%c0_10, %c0_11] : memref<64x32xf32, #tpu.memory_space<vmem>>, vector<64x32xf32>
    %cst_12 = arith.constant dense<0.000000e+00> : vector<8x32xf32>
    %18 = tpu.matmul %16, %17, %cst_12 {dimension_numbers = #tpu.dot_dimension_numbers<[1], [0], [0], [1], [0, 0, 1, 1], [], []>} : vector<8x64xf32>, vector<64x32xf32>, vector<8x32xf32> -> vector<8x32xf32>
    %19 = vector.broadcast %2 : vector<1x32xf32> to vector<8x32xf32>
    %20 = arith.addf %18, %19 : vector<8x32xf32>
    %cst_13 = arith.constant 0.000000e+00 : f32
    %21 = vector.broadcast %cst_13 : f32 to vector<8x32xf32>
    %22 = arith.maximumf %20, %21 : vector<8x32xf32>
    %23 = math.absf %20 : vector<8x32xf32>
    %cst_14 = arith.constant 0.000000e+00 : f32
    %24 = vector.broadcast %cst_14 : f32 to vector<8x32xf32>
    %25 = arith.subf %24, %23 : vector<8x32xf32>
    %26 = math.exp %25 : vector<8x32xf32>
    %27 = math.log1p %26 : vector<8x32xf32>
    %28 = arith.addf %22, %27 : vector<8x32xf32>
    "tpu.trace_start"() <{level = 10 : i32, message = "ok,bk->ob"}> : () -> ()
    %cst_15 = arith.constant dense<0.000000e+00> : vector<1x8xf32>
    %29 = tpu.matmul %3, %28, %cst_15 {dimension_numbers = #tpu.dot_dimension_numbers<[1], [1], [0], [0], [0, 0, 1, 0], [], []>} : vector<1x32xf32>, vector<8x32xf32>, vector<1x8xf32> -> vector<1x8xf32>
    "tpu.trace_stop"() : () -> ()
    %30 = vector.broadcast %4 : vector<1x1xf32> to vector<1x8xf32>
    %31 = arith.addf %29, %30 : vector<1x8xf32>
    %cst_16 = arith.constant 0.000000e+00 : f32
    %32 = vector.broadcast %cst_16 : f32 to vector<1x8xf32>
    %33 = arith.subf %32, %31 : vector<1x8xf32>
    %34 = math.exp %33 : vector<1x8xf32>
    %cst_17 = arith.constant 1.000000e+00 : f32
    %35 = vector.broadcast %cst_17 : f32 to vector<1x8xf32>
    %36 = arith.addf %35, %34 : vector<1x8xf32>
    %cst_18 = arith.constant 1.000000e+00 : f32
    %37 = vector.broadcast %cst_18 : f32 to vector<1x8xf32>
    %38 = arith.divf %37, %36 : vector<1x8xf32>
    %c0_19 = arith.constant 0 : index
    %c0_20 = arith.constant 0 : index
    %39 = vector.load %arg5[%c0_19, %c0_20] : memref<1x8xf32, #tpu.memory_space<vmem>>, vector<1x8xf32>
    tpu.vector_store %arg5[%c0_19, %c0_20], %38 {strides = array<i32>} : memref<1x8xf32, #tpu.memory_space<vmem>>, vector<1x8xf32>,
    return
  }
  func.func @transform_0(%arg0: i32) -> (i32, i32) {
    %c0_i32 = arith.constant 0 : i32
    %c0_i32_0 = arith.constant 0 : i32
    return %arg0, %c0_i32 : i32, i32
  }
  func.func @transform_1(%arg0: i32) -> (i32, i32) {
    %c0_i32 = arith.constant 0 : i32
    %c0_i32_0 = arith.constant 0 : i32
    %c0_i32_1 = arith.constant 0 : i32
    return %c0_i32, %c0_i32_0 : i32, i32
  }
  func.func @transform_2(%arg0: i32) -> (i32, i32) {
    %c0_i32 = arith.constant 0 : i32
    %c0_i32_0 = arith.constant 0 : i32
    %c0_i32_1 = arith.constant 0 : i32
    return %c0_i32, %c0_i32_0 : i32, i32
  }
  func.func @transform_3(%arg0: i32) -> (i32, i32) {
    %c0_i32 = arith.constant 0 : i32
    %c0_i32_0 = arith.constant 0 : i32
    %c0_i32_1 = arith.constant 0 : i32
    return %c0_i32, %c0_i32_0 : i32, i32
  }
  func.func @transform_4(%arg0: i32) -> (i32, i32) {
    %c0_i32 = arith.constant 0 : i32
    %c0_i32_0 = arith.constant 0 : i32
    return %c0_i32, %arg0 : i32, i32
  }
}

</mosaic_0001>

<bundles_post_ra>
// kernel: teacher_forward_batched.1
= control target key start
LH: loop header
LB: loop body
LE: loop exit
PB: predicated region body
PF: predicated region fallthrough
CT: control target
= control target key end

     0   :  { %v441_v3 = vmov 0.0|0.0   ;;  %vm442_vm0 = vmmov 0   ;;  %v443_v6 = vmov 0.0   ;;  %s537_s0 = inlined_call_operand.vmem [shape: f32[8,32], index: 0, kind: input, shape index: {}]   ;;  %s538_s1 = inlined_call_operand.vmem [shape: f32[32,64], index: 1, kind: input, shape index: {}]   ;;  %s539_s2 = inlined_call_operand.vmem [shape: f32[64,32], index: 2, kind: input, shape index: {}]   ;;  %s540_s3 = inlined_call_operand.vmem [shape: f32[8,64], index: 3, kind: input, shape index: {}]   ;;  %s541_s4 = inlined_call_operand.hbm [shape: f32[1,8], index: 4, kind: output, shape index: {}]  }
   0x1   :  { %v23_v0 = vld [vmem:[%s538_s1] sm:$0xff]  ;;  %v24_v1 = vld [vmem:[%s538_s1 + $0x8] sm:$0xff]  ;;  %v25_v2 = vld [vmem:[%s538_s1 + $0x10] sm:$0xff]  ;;  %381 = vmatprep.subr.bf16.mxu0 %v441_v3  ;;  %354 = vmatprep.mubr.msk.f32.mxu0 %vm442_vm0, %v443_v6 }
   0x2   :  { %v382_v4 = vpack.c.bf16 %v24_v1, %v23_v0  ;;  %v26_v5 = vld [vmem:[%s538_s1 + $0x18] sm:$0xff]  ;;  %387 = vmatprep.subr.bf16.mxu1 %v441_v3  ;;  %373 = vmatprep.mubr.msk.f32.mxu1 %vm442_vm0, %v443_v6 }
   0x3   :  { %9 = vsyncpa [#allocation3], 0  ;;  %v385_v7 = vpack.c.bf16 %v26_v5, %v25_v2  ;;  %v18_v8 = vld [vmem:[%s537_s0] sm:$0xff]  ;;  %vm31_vm1 = vcmask 261120   ;;  %v121_v10 = vld [vmem:[%s539_s2 + $0x8] sm:$0xff]  ;;  %vm132_vm3 = vcmask 523264  }
   0x4   :  { %383 = vmatpush3.bf16.msra.mxu0 %v382_v4  ;;  %v120_v9 = vld [vmem:[%s539_s2] sm:$0xff]  ;;  %v122_v12 = vld [vmem:[%s539_s2 + $0x10] sm:$0xff]  ;;  %v123_v13 = vld [vmem:[%s539_s2 + $0x18] sm:$0xff]  ;;  %v444_v40 = vmov 0   ;;  %s445_s20 = smov [#allocation2]   ;;  %vm308_vm5 = vcmask 57344  }
   0x5   :  { %384 = vmatprep.subr.bf16.mxu0 %v441_v3  ;;  %v388_v11 = vpack.c.bf16 %v121_v10, %v120_v9  ;;  %v391_v14 = vpack.c.bf16 %v123_v13, %v122_v12  ;;  %v124_v15 = vld [vmem:[%s539_s2 + $0x20] sm:$0xff]  ;;  %v125_v16 = vld [vmem:[%s539_s2 + $0x28] sm:$0xff]  ;;  %v126_v18 = vld [vmem:[%s539_s2 + $0x30] sm:$0xff]  ;;  %404 = vset.pattern.permute.xlu0 %v444_v40  ;;  %s316_s21 = sshll.u32 %s445_s20, 4  ;;  %s317_s21 = int_to_ptr.vmem [resolvable:$true] %s316_s21 }
   0x6   :  { %v394_v17 = vpack.c.bf16 %v125_v16, %v124_v15  ;;  %v127_v19 = vld [vmem:[%s539_s2 + $0x38] sm:$0xff]  ;;  %v324_v21 = vld [vmem:[%s540_s3] ss:$0 sm:$0xff]  ;;  %v22_v39 = vld [vmem:[%s540_s3 + $0x3] sm:$0x1]  ;;  %s417_s22 = scalar_lea.vmem %s317_s21, 16  ;;  %p422_p1 = scmp.lt.s32.totalorder %s317_s21, %s317_s21 }
   0x7   :  { %389 = vmatpush3.bf16.msra.mxu1 %v388_v11  ;;  %v397_v20 = vpack.c.bf16 %v127_v19, %v126_v18  ;;  %223 = vperm.xlu0 %404, %v22_v39   ;;  %v326_v41 = vld [vmem:[%s540_s3 + $0x1] ss:$0 sm:$0xff]  ;;  %v21_v59 = vld [vmem:[%s540_s3 + $0x2] sm:$0x1]  ;;  %p418_p0 = scmp.ne.s32.totalorder %s317_s21, %s417_s22  ;;  %s421_s3 = scalar_lea.vmem %s317_s21, 32 }
   0x8   :  { %386 = vmatpush3.bf16.msra.mxu0 %v385_v7  ;;  %390 = vmatprep.subr.bf16.mxu1 %v441_v3  ;;  %p423_p2 = scmp.lt.s32.totalorder %s421_s3, %s417_s22 }
   0x9   :  { %376 = vmatprep.subr.mxu0 %v443_v6 }
   0xa   :  { %p424_p3 = por %p423_p2, %p422_p1 }
   0xb   :  { %355 = vmatmul.mubr.msk.f32.vlgmr.msra.gmra.mrb[0].mxu0 %vm31_vm1, %v18_v8  ;;  %392 = vmatpush3.bf16.msra.mxu1 %v391_v14 }
   0xc   :  { %378 = vmatprep.mubr.msk.f32.mxu0 %vm442_vm0, %v443_v6  ;;  %393 = vmatprep.subr.bf16.mxu1 %v441_v3  ;;  %p425_p4 = pnand %p424_p3, %p418_p0 }
   0xf   :  { %395 = vmatpush3.bf16.msra.mxu1 %v394_v17 }
  0x10   :  { %396 = vmatprep.subr.bf16.mxu1 %v441_v3 }
  0x13   :  { %398 = vmatpush3.bf16.msra.mxu1 %v397_v20 }
  0x86   :  { %v224_v60 = vpop.permute.xlu0 %223 }
  0xde   :  { %v101_v22 = vpop.f32.mrb[0].mxu0 }
  0xdf   :  { %v102_v23 = vadd.f32 %v324_v21, %v101_v22  ;;  %v356_v24 = vpop.f32.mrb[1].mxu0 }
  0xe1   :  { %v106_v25 = vand.u32 2147483647, %v102_v23  ;;  %v105_v36 = vmax.f32 %v102_v23, 0.0 }
  0xe3   :  { %v107_v26 = vsub.f32 0.0, %v106_v25 }
  0xe5   :  { %v108_v27 = vmul.f32 1.442695, %v107_v26 }
  0xe7   :  { %405 = vpow2.f32 %v108_v27 }
  0xf1   :  { %v406_v28 = vpop.eup %405 }
  0xf2   :  { %v110_v29 = vadd.f32 1.0, %v406_v28  ;;  %v113_v30 = vmul.f32 -0.5, %v406_v28  ;;  %v116_v32 = vand.u32 2147483647, %v406_v28 }
  0xf4   :  { %407 = vlog2.f32 %v110_v29  ;;  %v114_v31 = vadd.f32 1.0, %v113_v30  ;;  %vm117_vm2 = vcmp.lt.f32.partialorder %v116_v32, 0.0004427343 }
  0xf6   :  { %v115_v35 = vmul.f32 %v406_v28, %v114_v31 }
  0xfe   :  { %v408_v33 = vpop.eup %407 }
  0xff   :  { %v112_v34 = vmul.f32 0.6931472, %v408_v33 }
 0x101   :  { %v118_v37 = vsel %vm117_vm2, %v115_v35, %v112_v34 }
 0x102   :  { %v119_v38 = vadd.f32 %v118_v37, %v105_v36 }
 0x104   :  { %374 = vmatmul.mubr.msk.f32.vlgmr.msra.gmra.mrb[0].mxu1 %vm132_vm3, %v119_v38 }
 0x1d7   :  { %v202_v42 = vpop.f32.mrb[0].mxu1 }
 0x1d8   :  { %v203_v43 = vadd.f32 %v326_v41, %v202_v42  ;;  %v375_v44 = vpop.f32.mrb[1].mxu1 }
 0x1da   :  { %v207_v45 = vand.u32 2147483647, %v203_v43  ;;  %v206_v56 = vmax.f32 %v203_v43, 0.0 }
 0x1dc   :  { %v208_v46 = vsub.f32 0.0, %v207_v45 }
 0x1de   :  { %v209_v47 = vmul.f32 1.442695, %v208_v46 }
 0x1e0   :  { %409 = vpow2.f32 %v209_v47 }
 0x1ea   :  { %v410_v48 = vpop.eup %409 }
 0x1eb   :  { %v211_v49 = vadd.f32 1.0, %v410_v48  ;;  %v214_v50 = vmul.f32 -0.5, %v410_v48  ;;  %v217_v52 = vand.u32 2147483647, %v410_v48 }
 0x1ed   :  { %411 = vlog2.f32 %v211_v49  ;;  %v215_v51 = vadd.f32 1.0, %v214_v50  ;;  %vm218_vm4 = vcmp.lt.f32.partialorder %v217_v52, 0.0004427343 }
 0x1ef   :  { %v216_v55 = vmul.f32 %v410_v48, %v215_v51 }
 0x1f7   :  { %v412_v53 = vpop.eup %411 }
 0x1f8   :  { %v213_v54 = vmul.f32 0.6931472, %v412_v53 }
 0x1fa   :  { %v219_v57 = vsel %vm218_vm4, %v216_v55, %v213_v54 }
 0x1fb   :  { %v220_v58 = vadd.f32 %v219_v57, %v206_v56 }
 0x1fd   :  { %377 = vmatpush3.xpose.msk.msra.mxu0 %vm31_vm1, %v220_v58 }
 0x200   :  { %379 = vmatmul.mubr.msk.f32.vlgmr.msra.gmra.mrb[2].mxu0 %vm31_vm1, %v21_v59 }
 0x2d3   :  { %v298_v61 = vpop.f32.mrb[2].mxu0 }
 0x2d4   :  { %v299_v62 = vadd.f32 %v298_v61, %v224_v60  ;;  %v380_v63 = vpop.f32.mrb[3].mxu0 }
 0x2d6   :  { %v302_v0 = vsub.f32 0.0, %v299_v62 }
 0x2d8   :  { %v303_v1 = vmul.f32 1.442695, %v302_v0 }
 0x2da   :  { %413 = vpow2.f32 %v303_v1 }
 0x2e4   :  { %v414_v2 = vpop.eup %413 }
 0x2e5   :  { %v305_v3 = vadd.f32 1.0, %v414_v2 }
 0x2e7   :  { %415 = vrcp.f32 %v305_v3 }
 0x2f1   :  { %v416_v4 = vpop.eup %415 }
 0x2f2   :  { %309 = vst.msk [vmem:[#allocation2] sm:$0x1] %vm308_vm5, %v416_v4 }
 0x2f3   :  { %428 = shalt.err (!%p425_p4)
}
 0x2f4   :  { %s429_s1 = scalar_lea.hbm %s541_s4, 16 }
 0x2f5   :  { %p430_p5 = scmp.ne.s32.totalorder %s541_s4, %s429_s1  ;;  %p433_p6 = scmp.lt.u32.totalorder %s429_s1, %s541_s4 }
 0x2f7   :  { %p435_p7 = pnand %p433_p6, %p430_p5 }
 0x2f9   :  { %438 = shalt.err (!%p435_p7)
}
 0x2fa   :  { %319 = dma.vmem_to_hbm [thread:$0]  %s317_s21, 16, %s541_s4, [#allocation3]  }
 0x2fb   :  { %439 = dma.done.wait [#allocation3], 16  }
 0x2fc   :  { %440 = vsyncadd [#allocation3], 4294967280 }
 0x2fd   :  { %323 = vsyncpa [#allocation3], 1 }

</bundles_post_ra>
